<compile_context>
chip_gen: v7x
topology: tpu7x:2x2x1
jax: 0.10.0
libtpu: 0.0.40
codegen_flags: <defaults>
</compile_context>

<pallas_src>
import jax
import jax.numpy as jnp
from jax.experimental import pallas as pl
from jax.experimental.pallas import tpu as pltpu


def _static_ipow(x, n: int):
    """x**n for static integer n >= 1 via square-and-multiply (VALU mults only)."""
    assert n >= 1
    result = None
    base = x
    while n > 0:
        if n & 1:
            result = base if result is None else result * base
        n >>= 1
        if n > 0:
            base = base * base
    return result


def _make_bessel_kernel(cutoff: float, envelope_exponent: int):
    # Envelope constants (exactly as in DimeNet's Envelope module)
    p = envelope_exponent + 1
    a = -(p + 1) * (p + 2) / 2.0
    b = p * (p + 2) * 1.0
    c = -p * (p + 1) / 2.0
    inv_cutoff = 1.0 / cutoff

    def kernel(d_ref, freq_ref, out_ref):
        # d_ref:    (1,  TE)  edge distances tile (lane-dense)
        # freq_ref: (R,  1)   bessel frequencies
        # out_ref:  (R,  TE)  radial basis output tile (lane-dense)
        x = d_ref[...] * inv_cutoff                       # d_scaled, (1, TE)
        x_p_0 = _static_ipow(x, p - 1)                    # x^(p-1), chained mults
        x_p_1 = x_p_0 * x                                 # x^p
        x_p_2 = x_p_1 * x                                 # x^(p+1)
        env = 1.0 / x + a * x_p_0 + b * x_p_1 + c * x_p_2  # (1, TE)
        # (R,1) * (1,TE) -> (R,TE); env broadcasts along sublanes.
        out_ref[...] = env * jnp.sin(freq_ref[...] * x)

    return kernel


def bessel_basis_layer(d, frequencies, *, cutoff, envelope_exponent=5,
                       max_tile_e=8192):
    """d: [E] float32 edge distances; frequencies: [R] float32.

    Returns rbf [E, R] float32 (same layout/semantics as the PyTorch module).
    """
    E = d.shape[0]
    R = frequencies.shape[0]

    # Lane-dense tiling: tile must be a multiple of 128; small inputs -> 1 block.
    tile_e = min(int(max_tile_e), pl.cdiv(E, 128) * 128)
    E_pad = pl.cdiv(E, tile_e) * tile_e

    d_row = d.astype(jnp.float32).reshape(1, E)
    if E_pad != E:
        # Pad with a safe value (1.0) so padded lanes never hit 1/x = inf.
        d_row = jnp.pad(d_row, ((0, 0), (0, E_pad - E)), constant_values=1.0)
    freq_col = frequencies.astype(jnp.float32).reshape(R, 1)

    kernel = _make_bessel_kernel(float(cutoff), int(envelope_exponent))

    out_re = pl.pallas_call(
        kernel,
        out_shape=jax.ShapeDtypeStruct((R, E_pad), jnp.float32),
        grid_spec=pltpu.PrefetchScalarGridSpec(
            num_scalar_prefetch=0,
            grid=(E_pad // tile_e,),
            in_specs=[
                pl.BlockSpec((1, tile_e), lambda i: (0, i)),   # distances (lane-dense)
                pl.BlockSpec((R, 1), lambda i: (0, 0)),        # frequencies (replicated)
            ],
            out_specs=pl.BlockSpec((R, tile_e), lambda i: (0, i)),
        ),
        compiler_params=pltpu.CompilerParams(
            dimension_semantics=("parallel",),
        ),
    )(d_row, freq_col)                                         # (R, E_pad)

    # Strip padding and return in the module's [E, R] layout.
    return out_re[:, :E].T


def bessel_basis_reference(d, frequencies, *, cutoff, envelope_exponent=5):
    """Pure-JAX reference mirroring the PyTorch module."""
    p = envelope_exponent + 1
    a = -(p + 1) * (p + 2) / 2.0
    b = p * (p + 2) * 1.0
    c = -p * (p + 1) / 2.0
    x = (d / cutoff)[:, None]
    x_p_0 = x ** (p - 1)
    x_p_1 = x_p_0 * x
    x_p_2 = x_p_1 * x
    env = 1.0 / x + a * x_p_0 + b * x_p_1 + c * x_p_2
    return env * jnp.sin(frequencies[None, :] * x)


if __name__ == "__main__":
    num_radial = 8
    cutoff = 5.0
    envelope_exponent = 5
    num_edges = 200  # small synthetic edge set (not a multiple of 128 -> exercises padding)

    # Deterministic parameter init: frequencies = pi * [1..num_radial]
    frequencies = jnp.pi * jnp.arange(1, num_radial + 1, dtype=jnp.float32)

    # Synthetic edge distances in (0, cutoff)
    key = jax.random.PRNGKey(0)
    d = jax.random.uniform(key, (num_edges,), dtype=jnp.float32,
                           minval=0.1, maxval=cutoff)

    rbf = bessel_basis_layer(d, frequencies, cutoff=cutoff,
                             envelope_exponent=envelope_exponent)
    rbf = jax.block_until_ready(rbf)

    ref = bessel_basis_reference(d, frequencies, cutoff=cutoff,
                                 envelope_exponent=envelope_exponent)
    assert rbf.shape == (num_edges, num_radial)
    assert jnp.allclose(rbf, ref, rtol=1e-5, atol=1e-5), "mismatch vs reference"

    print("KERNEL_OK")
</pallas_src>

<mosaic_0001>
module attributes {stable_mosaic.version = 11 : i64} {
  func.func @kernel(%arg0: i32, %arg1: memref<1x256xf32, #tpu.memory_space<vmem>>, %arg2: memref<8x1xf32, #tpu.memory_space<vmem>>, %arg3: memref<8x256xf32, #tpu.memory_space<vmem>>) attributes {dimension_semantics = [#tpu.dimension_semantics<parallel>], iteration_bounds = array<i64: 1>, scalar_prefetch = 0 : i64, scratch_operands = 0 : i64, tpu.core_type = #tpu.core_type<tc>, window_params = [{transform_indices = @transform_0, window_bounds = array<i64: 1, 256>}, {pipeline_mode = #tpu.pipeline_mode<synchronous>, transform_indices = @transform_1, window_bounds = array<i64: 8, 1>}, {transform_indices = @transform_2, window_bounds = array<i64: 8, 256>}]} {
    %c0 = arith.constant 0 : index
    %c0_0 = arith.constant 0 : index
    %0 = vector.load %arg1[%c0, %c0_0] : memref<1x256xf32, #tpu.memory_space<vmem>>, vector<1x256xf32>
    %cst = arith.constant 2.000000e-01 : f32
    %1 = vector.broadcast %cst : f32 to vector<1x256xf32>
    %2 = arith.mulf %0, %1 : vector<1x256xf32>
    %3 = arith.mulf %2, %2 : vector<1x256xf32>
    %4 = arith.mulf %3, %3 : vector<1x256xf32>
    %5 = arith.mulf %2, %4 : vector<1x256xf32>
    %6 = arith.mulf %5, %2 : vector<1x256xf32>
    %7 = arith.mulf %6, %2 : vector<1x256xf32>
    %cst_1 = arith.constant 1.000000e+00 : f32
    %8 = vector.broadcast %cst_1 : f32 to vector<1x256xf32>
    %9 = arith.divf %8, %2 : vector<1x256xf32>
    %cst_2 = arith.constant -2.800000e+01 : f32
    %10 = vector.broadcast %cst_2 : f32 to vector<1x256xf32>
    %11 = arith.mulf %10, %5 : vector<1x256xf32>
    %12 = arith.addf %9, %11 : vector<1x256xf32>
    %cst_3 = arith.constant 4.800000e+01 : f32
    %13 = vector.broadcast %cst_3 : f32 to vector<1x256xf32>
    %14 = arith.mulf %13, %6 : vector<1x256xf32>
    %15 = arith.addf %12, %14 : vector<1x256xf32>
    %cst_4 = arith.constant -2.100000e+01 : f32
    %16 = vector.broadcast %cst_4 : f32 to vector<1x256xf32>
    %17 = arith.mulf %16, %7 : vector<1x256xf32>
    %18 = arith.addf %15, %17 : vector<1x256xf32>
    %c0_5 = arith.constant 0 : index
    %c0_6 = arith.constant 0 : index
    %19 = vector.load %arg2[%c0_5, %c0_6] : memref<8x1xf32, #tpu.memory_space<vmem>>, vector<8x1xf32>
    %20 = vector.broadcast %19 : vector<8x1xf32> to vector<8x256xf32>
    %21 = vector.broadcast %2 : vector<1x256xf32> to vector<8x256xf32>
    %22 = arith.mulf %20, %21 : vector<8x256xf32>
    %23 = math.sin %22 : vector<8x256xf32>
    %24 = vector.broadcast %18 : vector<1x256xf32> to vector<8x256xf32>
    %25 = arith.mulf %24, %23 : vector<8x256xf32>
    %c0_7 = arith.constant 0 : index
    %c0_8 = arith.constant 0 : index
    %26 = vector.load %arg3[%c0_7, %c0_8] : memref<8x256xf32, #tpu.memory_space<vmem>>, vector<8x256xf32>
    tpu.vector_store %arg3[%c0_7, %c0_8], %25 {strides = array<i32>} : memref<8x256xf32, #tpu.memory_space<vmem>>, vector<8x256xf32>,
    return
  }
  func.func @transform_0(%arg0: i32) -> (i32, i32) {
    %c0_i32 = arith.constant 0 : i32
    %c0_i32_0 = arith.constant 0 : i32
    return %c0_i32, %arg0 : i32, i32
  }
  func.func @transform_1(%arg0: i32) -> (i32, i32) {
    %c0_i32 = arith.constant 0 : i32
    %c0_i32_0 = arith.constant 0 : i32
    %c0_i32_1 = arith.constant 0 : i32
    return %c0_i32, %c0_i32_0 : i32, i32
  }
  func.func @transform_2(%arg0: i32) -> (i32, i32) {
    %c0_i32 = arith.constant 0 : i32
    %c0_i32_0 = arith.constant 0 : i32
    return %c0_i32, %arg0 : i32, i32
  }
}

</mosaic_0001>

<bundles_post_ra>
// kernel: tpu_custom_call.1
= control target key start
LH: loop header
LB: loop body
LE: loop exit
PB: predicated region body
PF: predicated region fallthrough
CT: control target
= control target key end

     0   :  { %v342_v1 = vmov 0   ;;  %s480_s0 = inlined_call_operand.vmem [shape: f32[1,256], index: 0, kind: input, shape index: {}]   ;;  %s481_s1 = inlined_call_operand.vmem [shape: f32[8,1], index: 1, kind: input, shape index: {}]   ;;  %s482_s2 = inlined_call_operand.hbm [shape: f32[8,256], index: 2, kind: output, shape index: {}]  }
   0x1   :  { %v27_v0 = vld [vmem:[%s481_s1] sm:$0xff]  ;;  %307 = vset.pattern.permute.xlu0 %v342_v1 }
   0x2   :  { %30 = vperm.xlu0 %307, %v27_v0  }
   0x3   :  { %7 = vsyncpa [#allocation3], 0  ;;  %v34_v2 = vlaneseq  ;;  %v12_v4 = vld [vmem:[%s480_s0] sm:$0x3]  ;;  %v343_v33 = vmov 683565275  }
   0x4   :  { %v375_v7 = vmul.f32 0.2, %v12_v4  ;;  %v344_v37 = vmov 2475754826   ;;  %v345_v39 = vmov 2131351028  }
   0x5   :  { %v368_v3 = vshrl.u32 %v34_v2, 7  ;;  %v346_v41 = vmov 2102212464   ;;  %v347_v43 = vmov 920167782   ;;  %s349_s0 = smov [#allocation2]  }
   0x6   :  { %v348_v50 = vmov 1326507024   ;;  %308 = vrcp.f32 %v375_v7  ;;  %s275_s1 = sshll.u32 %s349_s0, 4  ;;  %s276_s1 = int_to_ptr.vmem [resolvable:$true] %s275_s1 }
   0x7   :  { %v36_v5 = vsub.s32 0, %v368_v3  ;;  %v40_v6 = vsub.s32 1, %v368_v3  ;;  %s318_s13 = scalar_lea.vmem %s276_s1, 256  ;;  %p323_p1 = scmp.lt.s32.totalorder %s276_s1, %s276_s1 }
   0x8   :  { %p319_p0 = scmp.ne.s32.totalorder %s276_s1, %s318_s13  ;;  %p324_p2 = scmp.lt.s32.totalorder %s318_s13, %s318_s13 }
   0x9   :  { %v37_v8 = vrot.slane %v375_v7, %v36_v5  ;;  %v41_v9 = vrot.slane %v375_v7, %v40_v6 }
   0xa   :  { %p325_p3 = por %p324_p2, %p323_p1 }
   0xc   :  { %p326_p4 = pnand %p325_p3, %p319_p0 }
  0x81   :  { %v31_v10 = vpop.permute.xlu0 %30 }
  0x82   :  { %v383_v11 = vmul.f32 %v37_v8, %v31_v10  ;;  %v385_v12 = vmul.f32 %v41_v9, %v31_v10 }
  0x84   :  { %v46_v13 = vand.u32 2147483647, %v383_v11  ;;  %v49_v14 = vand.u32 2139095040, %v383_v11  ;;  %v153_v15 = vand.u32 2139095040, %v385_v12  ;;  %v150_v18 = vand.u32 2147483647, %v385_v12 }
  0x85   :  { %vm48_vm14 = vcmp.lt.s32.totalorder %v383_v11, 0 }
  0x86   :  { %v50_v16 = vshrl.u32 %v49_v14, 23  ;;  %v53_v17 = vand.u32 8388607, %v46_v13  ;;  %v154_v19 = vshrl.u32 %v153_v15, 23  ;;  %v395_v24 = vand.u32 8388607, %v150_v18 }
  0x87   :  { %vm47_vm15 = vcmp.le.f32.partialorder %v46_v13, 0.7853982 }
  0x88   :  { %v283_v20 = vadd.s32 4294967169, %v50_v16  ;;  %v287_v21 = vadd.s32 4294967169, %v154_v19  ;;  %v54_v23 = vor.u32 8388608, %v53_v17  ;;  %v158_v31 = vor.u32 8388608, %v395_v24 }
  0x8a   :  { %v56_v22 = vadd.s32 1, %v283_v20  ;;  %v160_v25 = vadd.s32 1, %v287_v21  ;;  %v397_v30 = vshll.u32 %v54_v23, 8 }
  0x8c   :  { %vm57_vm0 = vcmp.gt.s32.totalorder %v56_v22, 0  ;;  %vm161_vm1 = vcmp.gt.s32.totalorder %v160_v25, 0 }
  0x8d   :  { %v58_v26 = vsel %vm57_vm0, %v56_v22, 0  ;;  %v162_v29 = vsel %vm161_vm1, %v160_v25, 0  ;;  %vm152_vm0 = vcmp.lt.s32.totalorder %v385_v12, 0  ;;  %vm452_vm1 = vcmp.le.f32.partialorder %v150_v18, 0.7853982 }
  0x8e   :  { %v59_v27 = vshrl.u32 %v58_v26, 5  ;;  %v60_v28 = vand.u32 31, %v58_v26  ;;  %v400_v35 = vshrl.u32 %v162_v29, 5  ;;  %v164_v36 = vand.u32 31, %v162_v29 }
  0x90   :  { %v61_v32 = vsub.s32 32, %v60_v28  ;;  %v63_v34 = vshll.u32 %v343_v33, %v60_v28  ;;  %v66_v38 = vshll.u32 %v344_v37, %v60_v28  ;;  %v69_v40 = vshll.u32 %v345_v39, %v60_v28 }
  0x91   :  { %v72_v42 = vshll.u32 %v346_v41, %v60_v28  ;;  %v75_v44 = vshll.u32 %v347_v43, %v60_v28  ;;  %vm78_vm2 = vcmp.lt.s32.totalorder %v59_v27, 1  ;;  %vm79_vm3 = vcmp.lt.s32.totalorder %v59_v27, 2 }
  0x92   :  { %v64_v45 = vshrl.u32 %v344_v37, %v61_v32  ;;  %v67_v46 = vshrl.u32 %v345_v39, %v61_v32  ;;  %v70_v47 = vshrl.u32 %v346_v41, %v61_v32  ;;  %v62_v48 = vshrl.u32 %v343_v33, %v61_v32 }
  0x93   :  { %v73_v49 = vshrl.u32 %v347_v43, %v61_v32  ;;  %v76_v51 = vshrl.u32 %v348_v50, %v61_v32  ;;  %v165_v55 = vsub.s32 32, %v164_v36  ;;  %vm80_vm4 = vcmp.lt.s32.totalorder %v59_v27, 3 }
  0x94   :  { %v65_v52 = vor.u32 %v64_v45, %v63_v34  ;;  %v68_v53 = vor.u32 %v67_v46, %v66_v38  ;;  %v71_v54 = vor.u32 %v70_v47, %v69_v40  ;;  %vm81_vm5 = vcmp.lt.s32.totalorder %v59_v27, 4 }
  0x95   :  { %v74_v56 = vor.u32 %v73_v49, %v72_v42  ;;  %v77_v57 = vor.u32 %v76_v51, %v75_v44  ;;  %v167_v1 = vshll.u32 %v343_v33, %v164_v36  ;;  %v168_v8 = vshrl.u32 %v344_v37, %v165_v55 }
  0x96   :  { %v82_v58 = vsel %vm78_vm2, %v62_v48, %v65_v52  ;;  %v83_v59 = vsel %vm81_vm5, %v71_v54, 2102212464  ;;  %v86_v60 = vsel %vm78_vm2, %v65_v52, %v68_v53  ;;  %v90_v61 = vsel %vm78_vm2, %v68_v53, %v71_v54 }
  0x97   :  { %v84_v62 = vsel %vm80_vm4, %v68_v53, %v83_v59  ;;  %v87_v63 = vsel %vm81_vm5, %v74_v56, 920167782  ;;  %v91_v0 = vsel %vm81_vm5, %v77_v57, 1326507024  ;;  %v170_v9 = vshll.u32 %v344_v37, %v164_v36 }
  0x98   :  { %v88_v2 = vsel %vm80_vm4, %v71_v54, %v87_v63  ;;  %v92_v4 = vsel %vm80_vm4, %v74_v56, %v91_v0  ;;  %v85_v10 = vsel %vm79_vm3, %v82_v58, %v84_v62  ;;  %v171_v16 = vshrl.u32 %v345_v39, %v165_v55 }
  0x99   :  { %v89_v14 = vsel %vm79_vm3, %v86_v60, %v88_v2  ;;  %v93_v15 = vsel %vm79_vm3, %v90_v61, %v92_v4  ;;  %v169_v22 = vor.u32 %v168_v8, %v167_v1  ;;  %v173_v24 = vshll.u32 %v345_v39, %v164_v36 }
  0x9a   :  { %v409_v17 = vmul.u32.u64.low %v397_v30, %v93_v15  ;;  %v410_v19 = vmul.u32.u64.high %v397_v30, %v93_v15, %v409_v17  ;;  %v413_v20 = vmul.u32.u64.low %v397_v30, %v89_v14  ;;  %v414_v21 = vmul.u32.u64.high %v397_v30, %v89_v14, %v413_v20 }
  0x9b   :  { %v172_v23 = vor.u32 %v171_v16, %v170_v9  ;;  %v174_v25 = vshrl.u32 %v346_v41, %v165_v55  ;;  %v176_v26 = vshll.u32 %v346_v41, %v164_v36  ;;  %v177_v28 = vshrl.u32 %v347_v43, %v165_v55 }
  0x9c   :  { %v180_v29 = vshrl.u32 %v348_v50, %v165_v55  ;;  %v198_v32 = vshll.u32 %v158_v31, 8  ;;  %v101_v27 = vmul.u32 %v397_v30, %v85_v10  ;;  %v166_v34 = vshrl.u32 %v343_v33, %v165_v55 }
  0x9d   :  { %v175_v37 = vor.u32 %v174_v25, %v173_v24  ;;  %v179_v38 = vshll.u32 %v347_v43, %v164_v36  ;;  %vm103_vm6 = vc.u32 %v410_v19, %v413_v20  ;;  %v104_v40 = vadd.s32 1, %v414_v21 }
  0x9e   :  { %v178_v42 = vor.u32 %v177_v28, %v176_v26  ;;  %vm182_vm7 = vcmp.lt.s32.totalorder %v400_v35, 1  ;;  %vm184_vm8 = vcmp.lt.s32.totalorder %v400_v35, 3  ;;  %vm185_vm9 = vcmp.lt.s32.totalorder %v400_v35, 4 }
  0x9f   :  { %v181_v44 = vor.u32 %v180_v29, %v179_v38  ;;  %v190_v39 = vsel %vm182_vm7, %v169_v22, %v172_v23  ;;  %v105_v31 = vsel %vm103_vm6, %v104_v40, %v414_v21  ;;  %v187_v41 = vsel %vm185_vm9, %v175_v37, 2102212464 }
  0xa0   :  { %v191_v30 = vsel %vm185_vm9, %v178_v42, 920167782  ;;  %v194_v33 = vsel %vm182_vm7, %v172_v23, %v175_v37  ;;  %v106_v45 = vadd.s32 %v105_v31, %v101_v27  ;;  %vm183_vm10 = vcmp.lt.s32.totalorder %v400_v35, 2 }
  0xa1   :  { %v192_v36 = vsel %vm184_vm8, %v175_v37, %v191_v30  ;;  %v195_v43 = vsel %vm185_vm9, %v181_v44, 1326507024  ;;  %v186_v46 = vsel %vm182_vm7, %v166_v34, %v169_v22  ;;  %v188_v47 = vsel %vm184_vm8, %v172_v23, %v187_v41 }
  0xa2   :  { %v193_v48 = vsel %vm183_vm10, %v190_v39, %v192_v36  ;;  %v196_v49 = vsel %vm184_vm8, %v178_v42, %v195_v43  ;;  %v107_v50 = vadd.s32 536870912, %v106_v45  ;;  %v189_v57 = vsel %vm183_vm10, %v186_v46, %v188_v47  ;;  %v309_v47 = vpop.eup %308 }
  0xa3   :  { %v197_v51 = vsel %vm183_vm10, %v194_v33, %v196_v49  ;;  %v424_v52 = vmul.u32.u64.low %v198_v32, %v193_v48  ;;  %v425_v53 = vmul.u32.u64.high %v198_v32, %v193_v48, %v424_v52  ;;  %v205_v35 = vmul.u32 %v198_v32, %v189_v57 }
  0xa4   :  { %v427_v54 = vmul.u32.u64.low %v198_v32, %v197_v51  ;;  %v428_v55 = vmul.u32.u64.high %v198_v32, %v197_v51, %v427_v54  ;;  %v108_v56 = vshrl.u32 %v107_v50, 30  ;;  %v102_v16 = vadd.s32 %v413_v20, %v410_v19 }
  0xa5   :  { %v208_v59 = vadd.s32 1, %v425_v53  ;;  %v14_v22 = vmul.f32 %v375_v7, %v375_v7  ;;  %vm138_vm5 = vweird.f32 %v383_v11  ;;  %vm242_vm9 = vweird.f32 %v385_v12 }
  0xa6   :  { %v109_v58 = vshll.u32 %v108_v56, 30  ;;  %vm207_vm11 = vc.u32 %v428_v55, %v424_v52  ;;  %v206_v42 = vadd.s32 %v424_v52, %v428_v55  ;;  %v132_v41 = vsub.s32 4, %v108_v56 }
  0xa7   :  { %v209_v61 = vsel %vm207_vm11, %v208_v59, %v425_v53  ;;  %v15_v27 = vmul.f32 %v14_v22, %v14_v22 }
  0xa8   :  { %v110_v60 = vsub.s32 %v106_v45, %v109_v58  ;;  %v210_v62 = vadd.s32 %v209_v61, %v205_v35  ;;  %v133_v51 = vsel %vm48_vm14, %v132_v41, %v108_v56 }
  0xa9   :  { %v16_v40 = vmul.f32 %v15_v27, %v375_v7  ;;  %v135_v35 = vsel %vm47_vm15, 0, %v133_v51 }
  0xaa   :  { %v112_v63 = vsub.s32 0, %v110_v60  ;;  %v211_v0 = vadd.s32 536870912, %v210_v62 }
  0xab   :  { %v17_v43 = vmul.f32 %v16_v40, %v375_v7  ;;  %v21_v46 = vmul.f32 -28.0, %v16_v40 }
  0xac   :  { %v284_v1 = vmin.u32 %v112_v63, %v110_v60  ;;  %v433_v2 = vshrl.u32 %v211_v0, 30 }
  0xad   :  { %v18_v54 = vmul.f32 %v17_v43, %v375_v7  ;;  %v22_v55 = vadd.f32 %v309_v47, %v21_v46  ;;  %v23_v57 = vmul.f32 48.0, %v17_v43 }
  0xae   :  { %v114_v4 = vclz %v284_v1  ;;  %v213_v8 = vshll.u32 %v433_v2, 30  ;;  %v236_v61 = vsub.s32 4, %v433_v2 }
  0xaf   :  { %v24_v13 = vadd.f32 %v23_v57, %v22_v55  ;;  %v25_v0 = vmul.f32 -21.0, %v18_v54 }
  0xb0   :  { %v285_v9 = vadd.s32 4294967294, %v114_v4  ;;  %v214_v10 = vsub.s32 %v210_v62, %v213_v8  ;;  %v139_v62 = vadd.s32 3, %v135_v35  ;;  %v237_v1 = vsel %vm152_vm0, %v236_v61, %v433_v2 }
  0xb2   :  { %vm286_vm12 = vcmp.lt.s32.totalorder %v285_v9, 0  ;;  %v216_v15 = vsub.s32 0, %v214_v10  ;;  %v140_v8 = vand.u32 3, %v139_v62 }
  0xb3   :  { %v117_v14 = vsel %vm286_vm12, 0, %v285_v9  ;;  %v26_v9 = vadd.f32 %v25_v0, %v24_v13 }
  0xb4   :  { %v118_v17 = vsub.s32 32, %v117_v14  ;;  %v122_v21 = vsub.s32 4294967266, %v117_v14  ;;  %v288_v23 = vmin.u32 %v216_v15, %v214_v10  ;;  %v119_v24 = vshll.u32 %v110_v60, %v117_v14 }
  0xb5   :  { %v239_v14 = vsel %vm452_vm1, 0, %v237_v1  ;;  %vm145_vm2 = vcmp.eq.s32.totalorder %v140_v8, 2  ;;  %vm142_vm3 = vcmp.eq.s32.totalorder %v140_v8, 0  ;;  %v258_v2 = vrot.slane %v26_v9, %v36_v5 }
  0xb6   :  { %v120_v25 = vshrl.u32 %v102_v16, %v118_v17  ;;  %v123_v26 = vadd.s32 127, %v122_v21  ;;  %v218_v28 = vclz %v288_v23  ;;  %v243_v21 = vadd.s32 3, %v239_v14 }
  0xb7   :  { %vm141_vm4 = vcmp.lt.s32.totalorder %v140_v8, 2 }
  0xb8   :  { %v121_v29 = vor.u32 %v120_v25, %v119_v24  ;;  %v124_v32 = vshll.u32 %v123_v26, 23  ;;  %v289_v34 = vadd.s32 4294967294, %v218_v28  ;;  %v244_v25 = vand.u32 3, %v243_v21 }
  0xba   :  { %v125_v37 = vor.u32 4788187, %v124_v32  ;;  %vm290_vm13 = vcmp.lt.s32.totalorder %v289_v34, 0  ;;  %v128_v19 = vcvt.s32.f32 %v121_v29  ;;  %vm249_vm6 = vcmp.eq.s32.totalorder %v244_v25, 2 }
  0xbb   :  { %v221_v20 = vsel %vm290_vm13, 0, %v289_v34  ;;  %vm246_vm7 = vcmp.eq.s32.totalorder %v244_v25, 0  ;;  %vm245_vm8 = vcmp.lt.s32.totalorder %v244_v25, 2 }
  0xbc   :  { %v126_v38 = vand.u32 2147483647, %v125_v37  ;;  %v222_v44 = vsub.s32 32, %v221_v20  ;;  %v226_v39 = vsub.s32 4294967266, %v221_v20  ;;  %v223_v30 = vshll.u32 %v214_v10, %v221_v20 }
  0xbd   :  { %v262_v37 = vrot.slane %v26_v9, %v40_v6 }
  0xbe   :  { %v129_v31 = vmul.f32 %v128_v19, %v126_v38  ;;  %v224_v33 = vshrl.u32 %v206_v42, %v222_v44  ;;  %v227_v45 = vadd.s32 127, %v226_v39 }
  0xc0   :  { %v130_v36 = vxor.u32 2147483648, %v129_v31  ;;  %v225_v48 = vor.u32 %v224_v33, %v223_v30  ;;  %v228_v49 = vshll.u32 %v227_v45, 23 }
  0xc2   :  { %v131_v50 = vsel %vm48_vm14, %v130_v36, %v129_v31  ;;  %v229_v53 = vor.u32 4788187, %v228_v49  ;;  %v232_v59 = vcvt.s32.f32 %v225_v48 }
  0xc3   :  { %v134_v52 = vsel %vm47_vm15, %v383_v11, %v131_v50 }
  0xc4   :  { %310 = vcosq.f32 %v134_v52  ;;  %v230_v58 = vand.u32 2147483647, %v229_v53 }
  0xc5   :  { %312 = vsinq.f32 %v134_v52 }
  0xc6   :  { %v233_v60 = vmul.f32 %v232_v59, %v230_v58 }
  0xc8   :  { %v234_v63 = vxor.u32 2147483648, %v233_v60 }
  0xca   :  { %v235_v7 = vsel %vm152_vm0, %v234_v63, %v233_v60 }
  0xcb   :  { %v238_v4 = vsel %vm452_vm1, %v385_v12, %v235_v7 }
  0xcc   :  { %314 = vcosq.f32 %v238_v4 }
  0xcd   :  { %316 = vsinq.f32 %v238_v4 }
  0xce   :  { %v311_v10 = vpop.eup %310 }
  0xcf   :  { %v313_v15 = vpop.eup %312  ;;  %v146_v18 = vxor.u32 2147483648, %v311_v10 }
  0xd0   :  { %v143_v16 = vxor.u32 2147483648, %v313_v15 }
  0xd1   :  { %v147_v17 = vsel %vm145_vm2, %v146_v18, %v313_v15 }
  0xd2   :  { %v144_v22 = vsel %vm142_vm3, %v311_v10, %v143_v16 }
  0xd3   :  { %v148_v23 = vsel %vm141_vm4, %v144_v22, %v147_v17 }
  0xd4   :  { %v149_v24 = vsel %vm138_vm5, nan, %v148_v23 }
  0xd5   :  { %v265_v26 = vmul.f32 %v258_v2, %v149_v24 }
  0xd6   :  { %v315_v28 = vpop.eup %314 }
  0xd7   :  { %267 = vst [vmem:[#allocation2] sm:$0xff] %v265_v26  ;;  %v317_v29 = vpop.eup %316  ;;  %v250_v32 = vxor.u32 2147483648, %v315_v28 }
  0xd8   :  { %v247_v27 = vxor.u32 2147483648, %v317_v29 }
  0xd9   :  { %v251_v34 = vsel %vm249_vm6, %v250_v32, %v317_v29 }
  0xda   :  { %v248_v5 = vsel %vm246_vm7, %v315_v28, %v247_v27 }
  0xdb   :  { %v252_v11 = vsel %vm245_vm8, %v248_v5, %v251_v34 }
  0xdc   :  { %v253_v38 = vsel %vm242_vm9, nan, %v252_v11 }
  0xdd   :  { %v266_v19 = vmul.f32 %v262_v37, %v253_v38 }
  0xdf   :  { %268 = vst [vmem:[#allocation2 + $0x8] sm:$0xff] %v266_v19 }
  0xe0   :  { %329 = shalt.err (!%p326_p4)
}
  0xe1   :  { %s330_s16 = scalar_lea.hbm %s482_s2, 256 }
  0xe2   :  { %p331_p5 = scmp.ne.s32.totalorder %s482_s2, %s330_s16  ;;  %p334_p6 = scmp.lt.u32.totalorder %s330_s16, %s482_s2 }
  0xe4   :  { %p336_p7 = pnand %p334_p6, %p331_p5 }
  0xe6   :  { %339 = shalt.err (!%p336_p7)
}
  0xe7   :  { %278 = dma.vmem_to_hbm [thread:$0]  %s276_s1, 256, %s482_s2, [#allocation3]  }
  0xe8   :  { %340 = dma.done.wait [#allocation3], 256  }
  0xe9   :  { %341 = vsyncadd [#allocation3], 4294967040 }
  0xea   :  { %282 = vsyncpa [#allocation3], 1 }

</bundles_post_ra>
